<compile_context>
chip_gen: v6e
topology: v6e:2x2x1
jax: 0.10.0
libtpu: 0.0.40
codegen_flags: <defaults>
</compile_context>

<pallas_src>
import math

import jax
import jax.numpy as jnp
from jax import lax
from jax.experimental import pallas as pl
from jax.experimental.pallas import tpu as pltpu

# ---------------- model dims (small, deterministic) ----------------
B, S = 2, 8
H = 128            # hidden_size (module default is 768; reduced for the demo)
NH, DH = 2, 64     # attention heads, head dim
FFN = 4 * H
LAYERS = 2
VOCAB = 64
TYPE_VOCAB = 2
N_CLASSES = 5
C_PAD = 128        # lane-dense padded class dim for classifier + CRF
M = B * S
NEG = -1e9
LN_EPS = 1e-12


# ---------------- small helpers used inside kernels ----------------
def _ln(y, g, b):
    mu = jnp.mean(y, axis=-1, keepdims=True)
    d = y - mu
    var = jnp.mean(d * d, axis=-1, keepdims=True)
    return d * lax.rsqrt(var + LN_EPS) * g + b


def _gelu(y):
    # tanh approximation (as in the original kernel); y*y computed once.
    c = math.sqrt(2.0 / math.pi)
    y2 = y * y
    return 0.5 * y * (1.0 + jnp.tanh(c * y * (1.0 + 0.044715 * y2)))


def _spec(shape):
    return pl.BlockSpec(shape, lambda i: (0,) * len(shape))


# ---------------- fused encoder layer kernel ----------------
def _encoder_layer_kernel(x_ref, mask_ref, wqkv_ref, bqkv_ref, wo_ref, bo_ref,
                          ln1g_ref, ln1b_ref, w1_ref, b1_ref, w2_ref, b2_ref,
                          ln2g_ref, ln2b_ref, o_ref, ctx_ref):
    x = x_ref[...]                                        # (M, H) f32
    xb = x.astype(jnp.bfloat16)

    # fused Q|K|V projection: one lane-dense (H, 3H) matmul
    qkv = jnp.dot(xb, wqkv_ref[...], preferred_element_type=jnp.float32) + bqkv_ref[...]

    bias = (1.0 - mask_ref[...]) * NEG                    # (B, S) key-side additive mask
    scale = 1.0 / math.sqrt(DH)

    # attention per (batch, head), fully unrolled; ctx assembled in VMEM scratch
    for b in range(B):
        bias_b = bias[b:b + 1, :]                         # (1, S)
        r0 = b * S
        for h in range(NH):
            q = qkv[r0:r0 + S, h * DH:(h + 1) * DH].astype(jnp.bfloat16)
            k = qkv[r0:r0 + S, H + h * DH:H + (h + 1) * DH].astype(jnp.bfloat16)
            v = qkv[r0:r0 + S, 2 * H + h * DH:2 * H + (h + 1) * DH].astype(jnp.bfloat16)
            s = lax.dot_general(q, k, (((1,), (1,)), ((), ())),
                                preferred_element_type=jnp.float32) * scale + bias_b
            mx = jnp.max(s, axis=-1, keepdims=True)
            p = jnp.exp(s - mx)
            p = p / jnp.sum(p, axis=-1, keepdims=True)
            ctx_ref[pl.ds(r0, S), pl.ds(h * DH, DH)] = jnp.dot(
                p.astype(jnp.bfloat16), v, preferred_element_type=jnp.float32)

    attn = jnp.dot(ctx_ref[...].astype(jnp.bfloat16), wo_ref[...],
                   preferred_element_type=jnp.float32) + bo_ref[...]
    x1 = _ln(attn + x, ln1g_ref[...], ln1b_ref[...])

    f1 = jnp.dot(x1.astype(jnp.bfloat16), w1_ref[...],
                 preferred_element_type=jnp.float32) + b1_ref[...]
    g = _gelu(f1)
    f2 = jnp.dot(g.astype(jnp.bfloat16), w2_ref[...],
                 preferred_element_type=jnp.float32) + b2_ref[...]
    o_ref[...] = _ln(f2 + x1, ln2g_ref[...], ln2b_ref[...])


def encoder_layer(x, mask, lp):
    return pl.pallas_call(
        _encoder_layer_kernel,
        out_shape=jax.ShapeDtypeStruct((M, H), jnp.float32),
        grid=(1,),
        in_specs=[
            _spec((M, H)),        # x
            _spec((B, S)),        # mask
            _spec((H, 3 * H)),    # wqkv (bf16)
            _spec((1, 3 * H)),    # bqkv
            _spec((H, H)),        # wo (bf16)
            _spec((1, H)),        # bo
            _spec((1, H)), _spec((1, H)),       # ln1
            _spec((H, FFN)), _spec((1, FFN)),   # w1, b1
            _spec((FFN, H)), _spec((1, H)),     # w2, b2
            _spec((1, H)), _spec((1, H)),       # ln2
        ],
        out_specs=_spec((M, H)),
        scratch_shapes=[pltpu.VMEM((M, H), jnp.float32)],
        compiler_params=pltpu.CompilerParams(dimension_semantics=("arbitrary",)),
    )(x, mask, lp["wqkv"], lp["bqkv"], lp["wo"], lp["bo"],
      lp["ln1_g"], lp["ln1_b"], lp["w1"], lp["b1"], lp["w2"], lp["b2"],
      lp["ln2_g"], lp["ln2_b"])


# ---------------- embedding layernorm kernel ----------------
def _layernorm_kernel(x_ref, g_ref, b_ref, o_ref):
    o_ref[...] = _ln(x_ref[...], g_ref[...], b_ref[...])


def layernorm(x, g, b):
    Mx, Hx = x.shape
    return pl.pallas_call(
        _layernorm_kernel,
        out_shape=jax.ShapeDtypeStruct((Mx, Hx), jnp.float32),
        grid=(1,),
        in_specs=[_spec((Mx, Hx)), _spec((1, Hx)), _spec((1, Hx))],
        out_specs=_spec((Mx, Hx)),
        compiler_params=pltpu.CompilerParams(dimension_semantics=("arbitrary",)),
    )(x, g.reshape(1, Hx), b.reshape(1, Hx))


# ---------------- fused classifier + CRF log-likelihood kernel ----------------
def _clf_crf_kernel(x_ref, w_ref, b_ref, tags_ref, mask_ref,
                    start_ref, end_ref, trans_ref, logits_ref, llh_ref):
    # classifier: lane-dense (M, 128) logits; padded classes carry -1e9 emissions
    logits = jnp.dot(x_ref[...].astype(jnp.bfloat16), w_ref[...],
                     preferred_element_type=jnp.float32) + b_ref[...]
    logits_ref[...] = logits

    emis = logits.reshape(B, S, C_PAD)                    # zero-cost sublane split
    tags = tags_ref[...]                                  # (B, S) int32
    mask = mask_ref[...]                                  # (B, S) f32
    start = start_ref[...]                                # (1, C_PAD)
    end = end_ref[...]
    trans = trans_ref[...]                                # (C_PAD, C_PAD)

    iota = lax.broadcasted_iota(jnp.int32, (B, C_PAD), 1)

    def one_hot(t):
        return (iota == tags[:, t:t + 1]).astype(jnp.float32)   # (B, C_PAD)

    # ---------- numerator: score of the provided tag path ----------
    oh_prev = one_hot(0)
    emis0 = emis[:, 0, :]
    score = jnp.sum(oh_prev * (start + emis0), axis=-1, keepdims=True)   # (B, 1)
    last_oh = oh_prev

    # ---------- denominator: log partition (masked forward algorithm) ----------
    alpha = start + emis0                                               # (B, C_PAD)

    for t in range(1, S):
        oh_t = one_hot(t)
        m_t = mask[:, t:t + 1]                                          # (B, 1)
        emis_t = emis[:, t, :]                                          # (B, C_PAD)

        # numerator step
        trans_row = jnp.dot(oh_prev, trans, preferred_element_type=jnp.float32)
        step = (jnp.sum(trans_row * oh_t, axis=-1, keepdims=True)
                + jnp.sum(oh_t * emis_t, axis=-1, keepdims=True))
        score = score + m_t * step
        last_oh = m_t * oh_t + (1.0 - m_t) * last_oh
        oh_prev = oh_t

        # denominator step
        bcast = alpha[:, :, None] + trans[None, :, :] + emis_t[:, None, :]   # (B, Cp, Cc)
        mx = jnp.max(bcast, axis=1)                                          # (B, C_PAD)
        nxt = mx + jnp.log(jnp.sum(jnp.exp(bcast - mx[:, None, :]), axis=1))
        alpha = m_t * nxt + (1.0 - m_t) * alpha

    score = score + jnp.sum(last_oh * end, axis=-1, keepdims=True)

    final = alpha + end
    mx = jnp.max(final, axis=-1, keepdims=True)
    logz = mx + jnp.log(jnp.sum(jnp.exp(final - mx), axis=-1, keepdims=True))   # (B, 1)

    llh_ref[...] = score - logz


def clf_crf(x, tags, mask, packed):
    return pl.pallas_call(
        _clf_crf_kernel,
        out_shape=(jax.ShapeDtypeStruct((M, C_PAD), jnp.float32),
                   jax.ShapeDtypeStruct((B, 1), jnp.float32)),
        grid=(1,),
        in_specs=[
            _spec((M, H)),            # x
            _spec((H, C_PAD)),        # clf_w (bf16, lane-padded)
            _spec((1, C_PAD)),        # clf_b (pad = -1e9)
            _spec((B, S)),            # tags
            _spec((B, S)),            # mask
            _spec((1, C_PAD)),        # crf start (pad = -1e9)
            _spec((1, C_PAD)),        # crf end   (pad = -1e9)
            _spec((C_PAD, C_PAD)),    # crf trans (pad = 0)
        ],
        out_specs=(_spec((M, C_PAD)), _spec((B, 1))),
        compiler_params=pltpu.CompilerParams(dimension_semantics=("arbitrary",)),
    )(x, packed["clf_w"], packed["clf_b"], tags, mask,
      packed["crf_start"], packed["crf_end"], packed["crf_trans"])


# ---------------- param init / packing ----------------
def init_params(key):
    def normal(k, shape, scale=0.02):
        return scale * jax.random.normal(k, shape, dtype=jnp.float32)

    keys = iter(jax.random.split(key, 128))
    params = {
        "word_emb": normal(next(keys), (VOCAB, H)),
        "type_emb": normal(next(keys), (TYPE_VOCAB, H)),
        "pos_emb": normal(next(keys), (S, H)),
        "emb_ln_g": jnp.ones((H,), jnp.float32),
        "emb_ln_b": jnp.zeros((H,), jnp.float32),
        "layers": [],
        "clf_w": normal(next(keys), (H, N_CLASSES)),
        "clf_b": jnp.zeros((N_CLASSES,), jnp.float32),
        "crf_start": normal(next(keys), (N_CLASSES,), 0.1),
        "crf_end": normal(next(keys), (N_CLASSES,), 0.1),
        "crf_trans": normal(next(keys), (N_CLASSES, N_CLASSES), 0.1),
    }
    for _ in range(LAYERS):
        lp = {
            "wq": normal(next(keys), (H, H)), "bq": jnp.zeros((H,), jnp.float32),
            "wk": normal(next(keys), (H, H)), "bk": jnp.zeros((H,), jnp.float32),
            "wv": normal(next(keys), (H, H)), "bv": jnp.zeros((H,), jnp.float32),
            "wo": normal(next(keys), (H, H)), "bo": jnp.zeros((H,), jnp.float32),
            "ln1_g": jnp.ones((H,), jnp.float32), "ln1_b": jnp.zeros((H,), jnp.float32),
            "w1": normal(next(keys), (H, FFN)), "b1": jnp.zeros((FFN,), jnp.float32),
            "w2": normal(next(keys), (FFN, H)), "b2": jnp.zeros((H,), jnp.float32),
            "ln2_g": jnp.ones((H,), jnp.float32), "ln2_b": jnp.zeros((H,), jnp.float32),
        }
        params["layers"].append(lp)
    return params


def pack_params(p):
    # one-time re-layout: QKV concatenation, bf16 matmul weights, (1, N) biases,
    # classifier / CRF tensors padded to 128 lanes (padding made inert with -1e9).
    def row(v):
        return v.reshape(1, -1)

    packed = {
        "word_emb": p["word_emb"],
        "type_emb": p["type_emb"],
        "pos_emb": p["pos_emb"],
        "emb_ln_g": p["emb_ln_g"],
        "emb_ln_b": p["emb_ln_b"],
        "layers": [],
    }
    for lp in p["layers"]:
        packed["layers"].append({
            "wqkv": jnp.concatenate([lp["wq"], lp["wk"], lp["wv"]], axis=1).astype(jnp.bfloat16),
            "bqkv": row(jnp.concatenate([lp["bq"], lp["bk"], lp["bv"]])),
            "wo": lp["wo"].astype(jnp.bfloat16), "bo": row(lp["bo"]),
            "ln1_g": row(lp["ln1_g"]), "ln1_b": row(lp["ln1_b"]),
            "w1": lp["w1"].astype(jnp.bfloat16), "b1": row(lp["b1"]),
            "w2": lp["w2"].astype(jnp.bfloat16), "b2": row(lp["b2"]),
            "ln2_g": row(lp["ln2_g"]), "ln2_b": row(lp["ln2_b"]),
        })
    packed["clf_w"] = (jnp.zeros((H, C_PAD), jnp.float32)
                       .at[:, :N_CLASSES].set(p["clf_w"])).astype(jnp.bfloat16)
    packed["clf_b"] = jnp.full((1, C_PAD), NEG, jnp.float32).at[0, :N_CLASSES].set(p["clf_b"])
    packed["crf_start"] = jnp.full((1, C_PAD), NEG, jnp.float32).at[0, :N_CLASSES].set(p["crf_start"])
    packed["crf_end"] = jnp.full((1, C_PAD), NEG, jnp.float32).at[0, :N_CLASSES].set(p["crf_end"])
    packed["crf_trans"] = (jnp.zeros((C_PAD, C_PAD), jnp.float32)
                           .at[:N_CLASSES, :N_CLASSES].set(p["crf_trans"]))
    return packed


# ---------------- model glue ----------------
def bert_crf_forward(packed, token_ids, token_type_ids, token_masks, labels=None):
    # embedding gathers stay in glue (no clean rectangular BlockSpec for tiny gathers)
    pos_ids = jnp.arange(S)
    x = (packed["word_emb"][token_ids]
         + packed["type_emb"][token_type_ids]
         + packed["pos_emb"][pos_ids][None, :, :]).reshape(M, H)
    x = layernorm(x, packed["emb_ln_g"], packed["emb_ln_b"])

    mask = token_masks.astype(jnp.float32)
    for lp in packed["layers"]:
        x = encoder_layer(x, mask, lp)           # return_value='token_embeddings'

    # nn.Dropout(p=0.2): identity in eval mode.
    # TODO(synk): training-mode dropout RNG cannot match torch exactly; eval-mode identity used.

    tags = labels if labels is not None else jnp.zeros((B, S), jnp.int32)
    logits_pad, llh = clf_crf(x, tags.astype(jnp.int32), mask, packed)
    logits = logits_pad.reshape(B, S, C_PAD)[:, :, :N_CLASSES]

    if labels is not None:
        loss = -1.0 * jnp.sum(llh)               # torchcrf-style reduction='sum'
        return logits, loss
    return logits


if __name__ == "__main__":
    key = jax.random.PRNGKey(0)
    pkey, ikey = jax.random.split(key)
    packed = pack_params(init_params(pkey))

    k1, k2 = jax.random.split(ikey)
    token_ids = jax.random.randint(k1, (B, S), 0, VOCAB)
    token_type_ids = jnp.zeros((B, S), jnp.int32)
    lengths = jnp.array([S, S - 3])
    token_masks = (jnp.arange(S)[None, :] < lengths[:, None]).astype(jnp.float32)
    labels = jax.random.randint(k2, (B, S), 0, N_CLASSES)

    logits, loss = bert_crf_forward(packed, token_ids, token_type_ids, token_masks, labels)
    logits = jax.block_until_ready(logits)
    loss = jax.block_until_ready(loss)

    assert logits.shape == (B, S, N_CLASSES) and logits.dtype == jnp.float32
    assert loss.shape == () and bool(jnp.isfinite(loss))
    print("KERNEL_OK")
</pallas_src>

<mosaic_0001>
module attributes {stable_mosaic.version = 11 : i64} {
  func.func @_layernorm_kernel(%arg0: i32, %arg1: memref<16x128xf32, #tpu.memory_space<vmem>>, %arg2: memref<1x128xf32, #tpu.memory_space<vmem>>, %arg3: memref<1x128xf32, #tpu.memory_space<vmem>>, %arg4: memref<16x128xf32, #tpu.memory_space<vmem>>) attributes {dimension_semantics = [#tpu.dimension_semantics<arbitrary>], iteration_bounds = array<i64: 1>, scalar_prefetch = 0 : i64, scratch_operands = 0 : i64, tpu.core_type = #tpu.core_type<tc>, window_params = [{pipeline_mode = #tpu.pipeline_mode<synchronous>, transform_indices = @transform_0, window_bounds = array<i64: 16, 128>}, {pipeline_mode = #tpu.pipeline_mode<synchronous>, transform_indices = @transform_1, window_bounds = array<i64: 1, 128>}, {pipeline_mode = #tpu.pipeline_mode<synchronous>, transform_indices = @transform_2, window_bounds = array<i64: 1, 128>}, {pipeline_mode = #tpu.pipeline_mode<synchronous>, transform_indices = @transform_3, window_bounds = array<i64: 16, 128>}]} {
    %c0 = arith.constant 0 : index
    %c0_0 = arith.constant 0 : index
    %0 = vector.load %arg1[%c0, %c0_0] : memref<16x128xf32, #tpu.memory_space<vmem>>, vector<16x128xf32>
    %c0_1 = arith.constant 0 : index
    %c0_2 = arith.constant 0 : index
    %1 = vector.load %arg2[%c0_1, %c0_2] : memref<1x128xf32, #tpu.memory_space<vmem>>, vector<1x128xf32>
    %c0_3 = arith.constant 0 : index
    %c0_4 = arith.constant 0 : index
    %2 = vector.load %arg3[%c0_3, %c0_4] : memref<1x128xf32, #tpu.memory_space<vmem>>, vector<1x128xf32>
    %cst = arith.constant dense<0.000000e+00> : vector<16xf32>
    %3 = vector.multi_reduction <add>, %0, %cst [1] : vector<16x128xf32> to vector<16xf32>
    %4 = vector.shape_cast %3 : vector<16xf32> to vector<16x1xf32>
    %cst_5 = arith.constant 1.280000e+02 : f32
    %5 = vector.broadcast %cst_5 : f32 to vector<16x1xf32>
    %6 = arith.divf %4, %5 : vector<16x1xf32>
    %7 = vector.broadcast %6 : vector<16x1xf32> to vector<16x128xf32>
    %8 = arith.subf %0, %7 : vector<16x128xf32>
    %9 = arith.mulf %8, %8 : vector<16x128xf32>
    %cst_6 = arith.constant dense<0.000000e+00> : vector<16xf32>
    %10 = vector.multi_reduction <add>, %9, %cst_6 [1] : vector<16x128xf32> to vector<16xf32>
    %11 = vector.shape_cast %10 : vector<16xf32> to vector<16x1xf32>
    %cst_7 = arith.constant 1.280000e+02 : f32
    %12 = vector.broadcast %cst_7 : f32 to vector<16x1xf32>
    %13 = arith.divf %11, %12 : vector<16x1xf32>
    %cst_8 = arith.constant 9.99999996E-13 : f32
    %14 = vector.broadcast %cst_8 : f32 to vector<16x1xf32>
    %15 = arith.addf %13, %14 : vector<16x1xf32>
    %16 = math.rsqrt %15 : vector<16x1xf32>
    %17 = vector.broadcast %16 : vector<16x1xf32> to vector<16x128xf32>
    %18 = arith.mulf %8, %17 : vector<16x128xf32>
    %19 = vector.broadcast %1 : vector<1x128xf32> to vector<16x128xf32>
    %20 = arith.mulf %18, %19 : vector<16x128xf32>
    %21 = vector.broadcast %2 : vector<1x128xf32> to vector<16x128xf32>
    %22 = arith.addf %20, %21 : vector<16x128xf32>
    %c0_9 = arith.constant 0 : index
    %c0_10 = arith.constant 0 : index
    %23 = vector.load %arg4[%c0_9, %c0_10] : memref<16x128xf32, #tpu.memory_space<vmem>>, vector<16x128xf32>
    tpu.vector_store %arg4[%c0_9, %c0_10], %22 {strides = array<i32>} : memref<16x128xf32, #tpu.memory_space<vmem>>, vector<16x128xf32>,
    return
  }
  func.func @transform_0(%arg0: i32) -> (i32, i32) {
    %c0_i32 = arith.constant 0 : i32
    %c0_i32_0 = arith.constant 0 : i32
    %c0_i32_1 = arith.constant 0 : i32
    return %c0_i32, %c0_i32_0 : i32, i32
  }
  func.func @transform_1(%arg0: i32) -> (i32, i32) {
    %c0_i32 = arith.constant 0 : i32
    %c0_i32_0 = arith.constant 0 : i32
    %c0_i32_1 = arith.constant 0 : i32
    return %c0_i32, %c0_i32_0 : i32, i32
  }
  func.func @transform_2(%arg0: i32) -> (i32, i32) {
    %c0_i32 = arith.constant 0 : i32
    %c0_i32_0 = arith.constant 0 : i32
    %c0_i32_1 = arith.constant 0 : i32
    return %c0_i32, %c0_i32_0 : i32, i32
  }
  func.func @transform_3(%arg0: i32) -> (i32, i32) {
    %c0_i32 = arith.constant 0 : i32
    %c0_i32_0 = arith.constant 0 : i32
    %c0_i32_1 = arith.constant 0 : i32
    return %c0_i32, %c0_i32_0 : i32, i32
  }
}

</mosaic_0001>

<bundles_post_ra>
// kernel: tpu_custom_call.1
= control target key start
LH: loop header
LB: loop body
LE: loop exit
PB: predicated region body
PF: predicated region fallthrough
CT: control target
= control target key end

     0   :  { %8 = vsyncpa [#allocation3], 0  ;;  %s187_s0 = inlined_call_operand.hbm [shape: f32[16,128], index: 0, kind: input, shape index: {}]   ;;  %s188_s1 = inlined_call_operand.vmem [shape: f32[1,128], index: 1, kind: input, shape index: {}]   ;;  %s189_s2 = inlined_call_operand.vmem [shape: f32[1,128], index: 2, kind: input, shape index: {}]   ;;  %s190_s3 = inlined_call_operand.hbm [shape: f32[16,128], index: 3, kind: output, shape index: {}]  }
   0x1   :  { %9 = vsyncpa [#allocation4], 0  ;;  %s145_s12 = smov [#allocation2]  }
   0x2   :  { %s15_s13 = sshll.u32 %s145_s12, 4  ;;  %s16_s13 = int_to_ptr.vmem [resolvable:$true] %s15_s13 }
   0x3   :  { %s109_s14 = scalar_lea.vmem %s16_s13, 256  ;;  %p114_p1 = scmp.lt.s32.totalorder %s16_s13, %s16_s13 }
   0x4   :  { %p110_p0 = scmp.ne.s32.totalorder %s16_s13, %s109_s14  ;;  %p115_p2 = scmp.lt.s32.totalorder %s109_s14, %s109_s14 }
   0x6   :  { %p116_p3 = por %p115_p2, %p114_p1 }
   0x8   :  { %p117_p4 = pnand %p116_p3, %p110_p0 }
   0xa   :  { %120 = shalt.err (!%p117_p4)
}
   0xb   :  { %s146_s15 = smov 128   ;;  %s147_s16 = smov 8  }
   0xc   :  { %21 = dma.hbm_to_vmem [thread:$0]  %s187_s0, 256, %s16_s13, [#allocation3], %s146_s15, %s146_s15, %s147_s16  }
   0xd   :  { %141 = dma.done.wait [#allocation3], 256  }
   0xe   :  { %142 = vsyncadd [#allocation3], 4294967040  ;;  %v29_v0 = vld [vmem:[#allocation2] sm:$0xff]  ;;  %v30_v1 = vld [vmem:[#allocation2 + $0x8] sm:$0xff]  ;;  %s148_s22 = smov [#allocation5]  }
   0xf   :  { %33 = vadd.xlane.f32.xlu0 %v29_v0  ;;  %v91_v17 = vld [vmem:[%s188_s1] ss:$0 sm:$0xff]  ;;  %s79_s23 = sshll.u32 %s148_s22, 4  ;;  %s80_s23 = int_to_ptr.vmem [resolvable:$true] %s79_s23 }
  0x10   :  { %v92_v19 = vld [vmem:[%s189_s2] ss:$0 sm:$0xff]  ;;  %s121_s24 = scalar_lea.vmem %s80_s23, 256  ;;  %p126_p6 = scmp.lt.s32.totalorder %s80_s23, %s80_s23 }
  0x11   :  { %p122_p5 = scmp.ne.s32.totalorder %s80_s23, %s121_s24  ;;  %p127_p7 = scmp.lt.s32.totalorder %s121_s24, %s121_s24 }
  0x13   :  { %35 = vadd.xlane.f32.xlu0 %v30_v1  ;;  %p128_p8 = por %p127_p7, %p126_p6 }
  0x15   :  { %p129_p9 = pnand %p128_p8, %p122_p5 }
  0x98   :  { %v34_v2 = vpop.xlane.xlu0 %33 }
  0x99   :  { %v38_v3 = vmul.f32 0.0078125, %v34_v2 }
  0x9b   :  { %v40_v4 = vsub.f32 %v29_v0, %v38_v3 }
  0x9c   :  { %v36_v5 = vpop.xlane.xlu0 %35 }
  0x9d   :  { %v39_v6 = vmul.f32 0.0078125, %v36_v5  ;;  %v42_v7 = vmul.f32 %v40_v4, %v40_v4 }
  0x9f   :  { %v41_v8 = vsub.f32 %v30_v1, %v39_v6  ;;  %44 = vadd.xlane.f32.xlu1 %v42_v7 }
  0xa1   :  { %v43_v9 = vmul.f32 %v41_v8, %v41_v8 }
  0xa3   :  { %46 = vadd.xlane.f32.xlu1 %v43_v9 }
 0x128   :  { %v45_v10 = vpop.xlane.xlu1 %44 }
 0x129   :  { %v48_v11 = vmul.f32 0.0078125, %v45_v10 }
 0x12b   :  { %v50_v12 = vadd.f32 1e-12, %v48_v11 }
 0x12c   :  { %v47_v13 = vpop.xlane.xlu1 %46 }
 0x12d   :  { %97 = vrsqrt.f32 %v50_v12  ;;  %v49_v14 = vmul.f32 0.0078125, %v47_v13 }
 0x12f   :  { %v51_v15 = vadd.f32 1e-12, %v49_v14 }
 0x131   :  { %99 = vrsqrt.f32 %v51_v15 }
 0x13a   :  { %v98_v16 = vpop.eup %97 }
 0x13b   :  { %v54_v18 = vmul.f32 %v98_v16, %v40_v4 }
 0x13d   :  { %v62_v20 = vmul.f32 %v91_v17, %v54_v18 }
 0x13e   :  { %v100_v21 = vpop.eup %99 }
 0x13f   :  { %v55_v22 = vmul.f32 %v100_v21, %v41_v8  ;;  %v70_v23 = vadd.f32 %v92_v19, %v62_v20 }
 0x141   :  { %v63_v24 = vmul.f32 %v91_v17, %v55_v22  ;;  %72 = vst [vmem:[#allocation5] sm:$0xff] %v70_v23 }
 0x143   :  { %v71_v25 = vadd.f32 %v92_v19, %v63_v24 }
 0x145   :  { %73 = vst [vmem:[#allocation5 + $0x8] sm:$0xff] %v71_v25 }
 0x146   :  { %132 = shalt.err (!%p129_p9)
}
 0x147   :  { %85 = dma.vmem_to_hbm [thread:$0]  %s80_s23, 256, %s190_s3, [#allocation4], %s146_s15, %s146_s15, %s147_s16  }
 0x148   :  { %143 = dma.done.wait [#allocation4], 256  }
 0x149   :  { %144 = vsyncadd [#allocation4], 4294967040 }
 0x14a   :  { %89 = vsyncpa [#allocation3], 1 }
 0x14b   :  { %90 = vsyncpa [#allocation4], 1 }

</bundles_post_ra>
